<compile_context>
chip_gen: v6e
topology: v6e:2x2x1
jax: 0.10.0
libtpu: 0.0.40
codegen_flags: <defaults>
</compile_context>

<pallas_src>
import functools

import jax
import jax.numpy as jnp
from jax import lax
from jax.experimental import pallas as pl
from jax.experimental.pallas import tpu as pltpu


# ----------------------------------------------------------------------------
# Kernel: K shifted MXU matmuls over a halo'd input block + fused epilogue
# ----------------------------------------------------------------------------
def _ffn_kernel(x_ref, w_ref, b_ref, m_ref, o_ref, *, K, T_pad, activation):
    # x: (1, Cin, T_pad + K - 1) bf16     w: (K, co_t, Cin) bf16
    # b: (co_t, 1) f32                    m: (1, 1, T_pad) f32
    # o: (1, co_t, T_pad)
    def tap(k):
        xk = x_ref[0, :, k:k + T_pad]                 # static lane-shifted slice
        return jnp.dot(w_ref[k], xk, preferred_element_type=jnp.float32)

    y = tap(0)
    for k in range(1, K):                             # K is small -> static unroll
        y = y + tap(k)

    y = y + b_ref[...]                                # (co_t, 1) broadcast
    if activation == "gelu":
        y = y * jax.nn.sigmoid(1.702 * y)             # matches the PyTorch module
    else:
        y = jnp.maximum(y, 0.0)                       # relu path
    o_ref[0] = (y * m_ref[0]).astype(o_ref.dtype)     # fused output mask


# ----------------------------------------------------------------------------
# Wrapper
# ----------------------------------------------------------------------------
def ffn_forward(x, x_mask, w, b, *, kernel_size, activation=None,
                compute_dtype=jnp.bfloat16, out_dtype=jnp.float32):
    """x: (B, Cin, T), x_mask: (B, 1, T), w: (Cout, Cin, K), b: (Cout,)."""
    B, Cin, T = x.shape
    Cout = w.shape[0]
    K = kernel_size
    assert K % 2 == 1, "Conv1d 'same' padding (K//2) assumes odd kernel_size"
    pad = K // 2

    # lane-dense time axis (full-width stores, no masked partial vst)
    T_pad = max(128, pl.cdiv(T, 128) * 128)
    T_halo = T_pad + 2 * pad

    # mask-in, cast the dominant matmul operand to bf16 in HBM, add conv halo.
    # (multiply + cast + pad fuse into a single XLA pass.)
    xp = jnp.pad((x * x_mask).astype(compute_dtype),
                 ((0, 0), (0, 0), (pad, T_pad - T + pad)))        # (B,Cin,T_halo)
    mask_p = jnp.pad(x_mask.astype(jnp.float32),
                     ((0, 0), (0, 0), (0, T_pad - T)))            # (B,1,T_pad)

    wk = jnp.transpose(w, (2, 0, 1)).astype(compute_dtype)        # (K,Cout,Cin)
    b2 = b.reshape(Cout, 1).astype(jnp.float32)

    # Cout tiling: bounds the f32 epilogue tile at large Cout and guarantees
    # >= 2 grid steps for v7x's two TensorCores when B == 1.
    co_t = Cout
    if Cout % 256 == 0:
        co_t = 256
    if B == 1 and (Cout // co_t) < 2:
        half = co_t // 2
        if half >= 8 and half % 8 == 0 and Cout % half == 0:
            co_t = half
    n_co = Cout // co_t

    # explicit VMEM budget (double buffers + resident weights), capped for v7x
    est = (2 * Cin * T_halo * 2           # input slab (bf16), double-buffered
           + K * Cout * Cin * 2           # resident weights (bf16)
           + 2 * co_t * T_pad * 4         # output tile (f32), double-buffered
           + 2 * T_pad * 4 + Cout * 4)    # mask tile + bias
    vmem_limit = int(min(64 * 2 ** 20, max(16 * 2 ** 20, 4 * est)))

    kernel = functools.partial(_ffn_kernel, K=K, T_pad=T_pad,
                               activation=activation)
    out = pl.pallas_call(
        kernel,
        out_shape=jax.ShapeDtypeStruct((B, Cout, T_pad), out_dtype),
        grid=(B, n_co),
        in_specs=[
            # halo'd input slab: fetched once per batch (index ignores ci)
            pl.BlockSpec((1, Cin, T_halo), lambda bi, ci: (bi, 0, 0)),
            # weights: resident across the whole grid except the Cout tile
            pl.BlockSpec((K, co_t, Cin), lambda bi, ci: (0, ci, 0)),
            pl.BlockSpec((co_t, 1), lambda bi, ci: (ci, 0)),
            pl.BlockSpec((1, 1, T_pad), lambda bi, ci: (bi, 0, 0)),
        ],
        out_specs=pl.BlockSpec((1, co_t, T_pad), lambda bi, ci: (bi, ci, 0)),
        compiler_params=pltpu.CompilerParams(
            dimension_semantics=("parallel", "parallel"),   # megacore on v7x
            vmem_limit_bytes=vmem_limit,
        ),
    )(xp, wk, b2, mask_p)

    return out[:, :, :T] if T_pad != T else out


# ----------------------------------------------------------------------------
# Pure-JAX reference (mirrors the PyTorch FFN forward)
# ----------------------------------------------------------------------------
def ffn_reference(x, x_mask, w, b, *, kernel_size, activation=None):
    xm = x * x_mask
    y = lax.conv_general_dilated(
        xm, w, window_strides=(1,),
        padding=[(kernel_size // 2, kernel_size // 2)],
        dimension_numbers=("NCH", "OIH", "NCH"))
    y = y + b[None, :, None]
    if activation == "gelu":
        y = y * jax.nn.sigmoid(1.702 * y)
    else:
        y = jnp.maximum(y, 0.0)
    # dropout p=0.0 -> identity
    return y * x_mask


# ----------------------------------------------------------------------------
# Demo / self-check
# ----------------------------------------------------------------------------
if __name__ == "__main__":
    B, Cin, Cout, T = 2, 32, 64, 16
    kernel_size = 3

    key = jax.random.PRNGKey(0)
    kx, kw, kb = jax.random.split(key, 3)

    x = jax.random.normal(kx, (B, Cin, T), jnp.float32)
    lengths = jnp.array([T, 11])
    x_mask = (jnp.arange(T)[None, :] < lengths[:, None]).astype(
        jnp.float32)[:, None, :]                                  # (B, 1, T)

    w = jax.random.normal(kw, (Cout, Cin, kernel_size), jnp.float32) \
        * (Cin * kernel_size) ** -0.5
    b = jax.random.normal(kb, (Cout,), jnp.float32) * 0.01

    for act in (None, "gelu"):                # module default (relu) + gelu path
        fwd = jax.jit(functools.partial(
            ffn_forward, kernel_size=kernel_size, activation=act))
        out = fwd(x, x_mask, w, b)
        jax.block_until_ready(out)
        assert out.shape == (B, Cout, T)

        ref = ffn_reference(x, x_mask, w, b, kernel_size=kernel_size,
                            activation=act)
        # bf16 matmul operands with f32 accumulation -> loose tolerance
        err = float(jnp.max(jnp.abs(out - ref)))
        assert err < 5e-2, f"activation={act}: max abs err {err}"

    print("KERNEL_OK")
</pallas_src>

<mosaic_0001>
module attributes {stable_mosaic.version = 11 : i64} {
  func.func @_ffn_kernel(%arg0: i32, %arg1: i32, %arg2: memref<1x32x130xbf16, #tpu.memory_space<vmem>>, %arg3: memref<3x64x32xbf16, #tpu.memory_space<vmem>>, %arg4: memref<64x1xf32, #tpu.memory_space<vmem>>, %arg5: memref<1x1x128xf32, #tpu.memory_space<vmem>>, %arg6: memref<1x64x128xf32, #tpu.memory_space<vmem>>) attributes {dimension_semantics = [#tpu.dimension_semantics<parallel>, #tpu.dimension_semantics<parallel>], iteration_bounds = array<i64: 2, 1>, scalar_prefetch = 0 : i64, scratch_operands = 0 : i64, tpu.core_type = #tpu.core_type<tc>, window_params = [{transform_indices = @transform_0, window_bounds = array<i64: 1, 32, 130>}, {transform_indices = @transform_1, window_bounds = array<i64: 3, 64, 32>}, {transform_indices = @transform_2, window_bounds = array<i64: 64, 1>}, {transform_indices = @transform_3, window_bounds = array<i64: 1, 1, 128>}, {transform_indices = @transform_4, window_bounds = array<i64: 1, 64, 128>}]} {
    %c0 = arith.constant 0 : index
    %c0_0 = arith.constant 0 : index
    %c0_1 = arith.constant 0 : index
    %0 = vector.load %arg2[%c0, %c0_0, %c0_1] : memref<1x32x130xbf16, #tpu.memory_space<vmem>>, vector<1x32x128xbf16>
    %1 = vector.shape_cast %0 : vector<1x32x128xbf16> to vector<32x128xbf16>
    %c0_2 = arith.constant 0 : index
    %c0_3 = arith.constant 0 : index
    %c0_4 = arith.constant 0 : index
    %2 = vector.load %arg3[%c0_2, %c0_3, %c0_4] : memref<3x64x32xbf16, #tpu.memory_space<vmem>>, vector<1x64x32xbf16>
    %3 = vector.shape_cast %2 : vector<1x64x32xbf16> to vector<64x32xbf16>
    %cst = arith.constant dense<0.000000e+00> : vector<64x128xf32>
    %4 = tpu.matmul %3, %1, %cst {dimension_numbers = #tpu.dot_dimension_numbers<[1], [0], [0], [1], [0, 0, 1, 1], [], []>} : vector<64x32xbf16>, vector<32x128xbf16>, vector<64x128xf32> -> vector<64x128xf32>
    %c0_5 = arith.constant 0 : index
    %c0_6 = arith.constant 0 : index
    %c1 = arith.constant 1 : index
    %5 = vector.load %arg2[%c0_5, %c0_6, %c1] : memref<1x32x130xbf16, #tpu.memory_space<vmem>>, vector<1x32x128xbf16>
    %6 = vector.shape_cast %5 : vector<1x32x128xbf16> to vector<32x128xbf16>
    %c1_7 = arith.constant 1 : index
    %c0_8 = arith.constant 0 : index
    %c0_9 = arith.constant 0 : index
    %7 = vector.load %arg3[%c1_7, %c0_8, %c0_9] : memref<3x64x32xbf16, #tpu.memory_space<vmem>>, vector<1x64x32xbf16>
    %8 = vector.shape_cast %7 : vector<1x64x32xbf16> to vector<64x32xbf16>
    %cst_10 = arith.constant dense<0.000000e+00> : vector<64x128xf32>
    %9 = tpu.matmul %8, %6, %cst_10 {dimension_numbers = #tpu.dot_dimension_numbers<[1], [0], [0], [1], [0, 0, 1, 1], [], []>} : vector<64x32xbf16>, vector<32x128xbf16>, vector<64x128xf32> -> vector<64x128xf32>
    %10 = arith.addf %4, %9 : vector<64x128xf32>
    %c0_11 = arith.constant 0 : index
    %c0_12 = arith.constant 0 : index
    %c2 = arith.constant 2 : index
    %11 = vector.load %arg2[%c0_11, %c0_12, %c2] : memref<1x32x130xbf16, #tpu.memory_space<vmem>>, vector<1x32x128xbf16>
    %12 = vector.shape_cast %11 : vector<1x32x128xbf16> to vector<32x128xbf16>
    %c2_13 = arith.constant 2 : index
    %c0_14 = arith.constant 0 : index
    %c0_15 = arith.constant 0 : index
    %13 = vector.load %arg3[%c2_13, %c0_14, %c0_15] : memref<3x64x32xbf16, #tpu.memory_space<vmem>>, vector<1x64x32xbf16>
    %14 = vector.shape_cast %13 : vector<1x64x32xbf16> to vector<64x32xbf16>
    %cst_16 = arith.constant dense<0.000000e+00> : vector<64x128xf32>
    %15 = tpu.matmul %14, %12, %cst_16 {dimension_numbers = #tpu.dot_dimension_numbers<[1], [0], [0], [1], [0, 0, 1, 1], [], []>} : vector<64x32xbf16>, vector<32x128xbf16>, vector<64x128xf32> -> vector<64x128xf32>
    %16 = arith.addf %10, %15 : vector<64x128xf32>
    %c0_17 = arith.constant 0 : index
    %c0_18 = arith.constant 0 : index
    %17 = vector.load %arg4[%c0_17, %c0_18] : memref<64x1xf32, #tpu.memory_space<vmem>>, vector<64x1xf32>
    %18 = vector.broadcast %17 : vector<64x1xf32> to vector<64x128xf32>
    %19 = arith.addf %16, %18 : vector<64x128xf32>
    %cst_19 = arith.constant 0.000000e+00 : f32
    %20 = vector.broadcast %cst_19 : f32 to vector<64x128xf32>
    %21 = arith.maximumf %19, %20 : vector<64x128xf32>
    %c0_20 = arith.constant 0 : index
    %c0_21 = arith.constant 0 : index
    %c0_22 = arith.constant 0 : index
    %22 = vector.load %arg5[%c0_20, %c0_21, %c0_22] : memref<1x1x128xf32, #tpu.memory_space<vmem>>, vector<1x1x128xf32>
    %23 = vector.shape_cast %22 : vector<1x1x128xf32> to vector<1x128xf32>
    %24 = vector.broadcast %23 : vector<1x128xf32> to vector<64x128xf32>
    %25 = arith.mulf %21, %24 : vector<64x128xf32>
    %c0_23 = arith.constant 0 : index
    %c0_24 = arith.constant 0 : index
    %c0_25 = arith.constant 0 : index
    %26 = vector.load %arg6[%c0_23, %c0_24, %c0_25] : memref<1x64x128xf32, #tpu.memory_space<vmem>>, vector<1x64x128xf32>
    %27 = vector.shape_cast %26 : vector<1x64x128xf32> to vector<64x128xf32>
    %28 = vector.shape_cast %25 : vector<64x128xf32> to vector<1x64x128xf32>
    tpu.vector_store %arg6[%c0_23, %c0_24, %c0_25], %28 {strides = array<i32>} : memref<1x64x128xf32, #tpu.memory_space<vmem>>, vector<1x64x128xf32>,
    return
  }
  func.func @transform_0(%arg0: i32, %arg1: i32) -> (i32, i32, i32) {
    %c0_i32 = arith.constant 0 : i32
    %c0_i32_0 = arith.constant 0 : i32
    %c0_i32_1 = arith.constant 0 : i32
    return %arg0, %c0_i32, %c0_i32_0 : i32, i32, i32
  }
  func.func @transform_1(%arg0: i32, %arg1: i32) -> (i32, i32, i32) {
    %c0_i32 = arith.constant 0 : i32
    %c0_i32_0 = arith.constant 0 : i32
    %c0_i32_1 = arith.constant 0 : i32
    return %c0_i32, %arg1, %c0_i32_0 : i32, i32, i32
  }
  func.func @transform_2(%arg0: i32, %arg1: i32) -> (i32, i32) {
    %c0_i32 = arith.constant 0 : i32
    %c0_i32_0 = arith.constant 0 : i32
    return %arg1, %c0_i32 : i32, i32
  }
  func.func @transform_3(%arg0: i32, %arg1: i32) -> (i32, i32, i32) {
    %c0_i32 = arith.constant 0 : i32
    %c0_i32_0 = arith.constant 0 : i32
    %c0_i32_1 = arith.constant 0 : i32
    return %arg0, %c0_i32, %c0_i32_0 : i32, i32, i32
  }
  func.func @transform_4(%arg0: i32, %arg1: i32) -> (i32, i32, i32) {
    %c0_i32 = arith.constant 0 : i32
    %c0_i32_0 = arith.constant 0 : i32
    return %arg0, %arg1, %c0_i32 : i32, i32, i32
  }
}

</mosaic_0001>

<bundles_post_ra>
// kernel: ffn_forward.1
= control target key start
LH: loop header
LB: loop body
LE: loop exit
PB: predicated region body
PF: predicated region fallthrough
CT: control target
= control target key end

     0   :  { %s1096_s15 = smov 0   ;;  %s1098_s16 = smov 0   ;;  %s1229_s0 = inlined_call_operand.vmem [shape: bf16[2,32,130], index: 0, kind: input, shape index: {}]   ;;  %s1230_s1 = inlined_call_operand.vmem [shape: bf16[3,64,32], index: 1, kind: input, shape index: {}]   ;;  %s1231_s2 = inlined_call_operand.vmem [shape: f32[64,1], index: 2, kind: input, shape index: {}]   ;;  %s1232_s3 = inlined_call_operand.vmem [shape: f32[2,1,128], index: 3, kind: input, shape index: {}]   ;;  %s1233_s4 = inlined_call_operand.vmem [shape: f32[2,64,128], index: 4, kind: output, shape index: {}]  }
   0x1   :  { %s1100_s17 = smov 0  }
   0x2 LB: > { %s26_s18 = sadd.s32 1, %s1062_s16  ;;  %p881_p0 = scmp.ge.s32.totalorder %s1066_s17, 1  ;;  %s1066_s17 = sphi %s1100_s17, %s14_s17   ;;  %s1062_s16 = sphi %s1098_s16, %s1235_s16   ;;  %s1058_s15 = sphi %s1096_s15, %s1234_s15  }
   0x3   : > { %p28_p1 = scmp.ge.s32.totalorder %s26_s18, 2  ;;  %p206_p2 = scmp.lt.s32.totalorder %s1066_s17, 3 }
   0x5   : > { %s1237_s18 = smov (%p28_p1, %s26_s18), 0  ;;  %p207_p3 = pnand %p881_p0, %p206_p2 }
   0x6   : > { %p249_p4 = scmp.lt.s32.totalorder (!%p207_p3), %s1058_s15, 1  ;;  %s1068_s27 = smov (!%p207_p3), 127  }
   0x7   : > { %210 = sbr.rel (%p207_p3) target bundleno = 370 (0x172), region = 36  ;;  %s1069_s28 = smov (!%p207_p3), 126  }
   0xc   : > { %s1239_s15 = smov (!%p249_p4, %s1058_s15), 1  ;;  %v1030_v0 = vld [vmem:[%s1230_s1 + $0x20] sm:$0xff]   ;;  %vm354_vm0 = vcmask 261120   ;;  %v1031_v1 = vld [vmem:[%s1230_s1 + $0x30] sm:$0xff]   ;;  %v669_v7 = vld [vmem:[%s1231_s2 + $0x8] sm:$0xff]  ;;  %v1070_v8 = vmov 0  }
   0xd   : > { %s935_s19 = sshll.u32 %s1239_s15, 5  ;;  %959 = vmatprep.mubr.msk.bf16.mxu0 %vm354_vm0, %v1030_v0  ;;  %963 = vmatprep.mubr.msk.bf16.mxu1 %vm354_vm0, %v1031_v1  ;;  %v668_v6 = vld [vmem:[%s1231_s2] sm:$0xff]  ;;  %v671_v9 = vld [vmem:[%s1231_s2 + $0x18] sm:$0xff]  ;;  %v670_v10 = vld [vmem:[%s1231_s2 + $0x10] sm:$0xff]  ;;  %vm349_vm1 = vcmask 1039360   ;;  %vm578_vm2 = vcmask 1031168   ;;  %s268_s24 = scalar_lea.vmem %s1232_s3, %s1239_s15 }
   0xe   : > { %s1120_s22 = scalar_lea.vmem %s1229_s0, %s935_s19  ;;  %1023 = vset.pattern.permute.xlu1 %v1070_v8  ;;  %1022 = vset.pattern.permute.xlu0 %v1070_v8  ;;  %v673_v11 = vld [vmem:[%s1231_s2 + $0x28] sm:$0xff]  ;;  %v672_v12 = vld [vmem:[%s1231_s2 + $0x20] sm:$0xff]  ;;  %v675_v13 = vld [vmem:[%s1231_s2 + $0x38] sm:$0xff]  ;;  %s936_s25 = sshll.u32 %s1239_s15, 6 }
   0xf   : > { %v1024_v2 = vld [vmem:[%s1120_s22 + $0x10] ss:$8 sps:$4 sm:$0xff]   ;;  %v1026_v3 = vld [vmem:[%s1120_s22 + $0x14] ss:$8 sps:$4 sm:$0xff]   ;;  %v1027_v4 = vld [vmem:[%s1120_s22] ss:$8 sps:$4 sm:$0xff]  }
  0x10   : > { %345 = vrot.lane.b32.xlu0 %v1024_v2, %s1068_s27  ;;  %v1029_v5 = vld [vmem:[%s1120_s22 + $0x4] ss:$8 sps:$4 sm:$0xff]   ;;  %341 = vrot.lane.b32.xlu1 %v1027_v4, %s1068_s27  ;;  %v674_v14 = vld [vmem:[%s1231_s2 + $0x30] sm:$0xff] }
  0x11   : > { %v1034_v22 = vld [vmem:[%s1120_s22 + $0x10] ss:$8 sps:$4 sm:$0xff]   ;;  %v1032_v24 = vld [vmem:[%s1230_s1 + $0x28] sm:$0xff]   ;;  %v1036_v29 = vld [vmem:[%s1230_s1] sm:$0xff]  }
  0x12   : > { %v1033_v25 = vld [vmem:[%s1230_s1 + $0x38] sm:$0xff]   ;;  %v1035_v28 = vld [vmem:[%s1120_s22] ss:$8 sps:$4 sm:$0xff]   ;;  %v1040_v35 = vld [vmem:[%s1230_s1 + $0x10] sm:$0xff]  }
  0x13   : > { %v1037_v30 = vld [vmem:[%s1230_s1 + $0x40] sm:$0xff]   ;;  %v1038_v33 = vld [vmem:[%s1230_s1 + $0x8] sm:$0xff]   ;;  %v1041_v36 = vld [vmem:[%s1230_s1 + $0x50] sm:$0xff]  }
  0x14   : > { %347 = vrot.lane.b32.xlu0 %v1026_v3, %s1068_s27  ;;  %343 = vrot.lane.b32.xlu1 %v1029_v5, %s1068_s27  ;;  %v1039_v34 = vld [vmem:[%s1230_s1 + $0x48] sm:$0xff]   ;;  %v1042_v37 = vld [vmem:[%s1230_s1 + $0x18] sm:$0xff]  }
  0x15   : > { %v1043_v38 = vld [vmem:[%s1230_s1 + $0x58] sm:$0xff]   ;;  %v932_v63 = vld [vmem:[%s268_s24] ss:$0 sm:$0xff] }
  0x18   : > { %574 = vrot.lane.b32.xlu0 %v1024_v2, %s1069_s28  ;;  %576 = vrot.lane.b32.xlu1 %v1026_v3, %s1069_s28 }
  0x1c   : > { %570 = vrot.lane.b32.xlu0 %v1027_v4, %s1069_s28  ;;  %572 = vrot.lane.b32.xlu1 %v1029_v5, %s1069_s28  ;;  %s1210_s28 = scalar_lea.vmem %s1233_s4, %s936_s25 }
  0x20   : > { %678 = vperm.xlu0 %1022, %v668_v6   ;;  %683 = vperm.xlu1 %1023, %v669_v7  }
  0x24   : > { %693 = vperm.xlu0 %1022, %v671_v9   ;;  %688 = vperm.xlu1 %1023, %v670_v10  }
  0x28   : > { %703 = vperm.xlu0 %1022, %v673_v11   ;;  %698 = vperm.xlu1 %1023, %v672_v12  }
  0x2c   : > { %713 = vperm.xlu0 %1022, %v675_v13   ;;  %708 = vperm.xlu1 %1023, %v674_v14  }
  0x82   : > { %v346_v15 = vpop.permute.xlu0 %345  ;;  %v342_v16 = vpop.permute.xlu1 %341 }
  0x86   : > { %v348_v17 = vpop.permute.xlu0 %347  ;;  %v344_v19 = vpop.permute.xlu1 %343 }
  0x87   : > { %v351_v18 = vsel %vm349_vm1, %v346_v15, %v348_v17  ;;  %v350_v20 = vsel %vm349_vm1, %v342_v16, %v344_v19 }
  0x88   : > { %955 = vmatprep.subr.bf16.mxu0 %v351_v18  ;;  %991 = vmatprep.subr.bf16.mxu1 %v351_v18 }
  0x89   : > { %956 = vmatpush3.bf16.msra.mxu0 %v351_v18  ;;  %993 = vmatpush3.bf16.msra.mxu1 %v351_v18 }
  0x8a   : > { %957 = vmatprep.subr.bf16.mxu0 %v350_v20  ;;  %992 = vmatprep.subr.bf16.mxu1 %v350_v20  ;;  %v575_v21 = vpop.permute.xlu0 %574  ;;  %v577_v23 = vpop.permute.xlu1 %576 }
  0x8b   : > { %v580_v26 = vsel %vm578_vm2, %v575_v21, %v577_v23 }
  0x8d   : > { %958 = vmatpush3.bf16.msra.mxu0 %v350_v20  ;;  %994 = vmatpush3.bf16.msra.mxu1 %v350_v20 }
  0x8e   : > { %967 = vmatprep.subr.bf16.mxu1 %v1034_v22  ;;  %979 = vmatprep.subr.bf16.mxu0 %v580_v26  ;;  %v571_v27 = vpop.permute.xlu0 %570  ;;  %v573_v31 = vpop.permute.xlu1 %572 }
  0x8f   : > { %v579_v32 = vsel %vm578_vm2, %v571_v27, %v573_v31 }
  0x90   : > { %960 = vmatmul.mubr.msk.bf16.vlgmr.msra.gmra.mxu0 %vm354_vm0, %v1032_v24  ;;  %964 = vmatmul.mubr.msk.bf16.vlgmr.msra.gmra.mxu1 %vm354_vm0, %v1033_v25 }
  0x91   : > { %968 = vmatpush3.bf16.msra.mxu1 %v1034_v22  ;;  %980 = vmatpush3.bf16.msra.mxu0 %v580_v26 }
  0x92   : > { %969 = vmatprep.subr.bf16.mxu1 %v1035_v28  ;;  %981 = vmatprep.subr.bf16.mxu0 %v579_v32 }
  0x93   : > { %971 = vmatprep.mubr.msk.bf16.mxu1 %vm354_vm0, %v1036_v29  ;;  %983 = vmatprep.mubr.msk.bf16.mxu0 %vm354_vm0, %v1037_v30 }
  0x95   : > { %970 = vmatpush3.bf16.msra.mxu1 %v1035_v28  ;;  %982 = vmatpush3.bf16.msra.mxu0 %v579_v32 }
  0x98   : > { %972 = vmatmul.mubr.msk.bf16.vlgmr.msra.gmra.mxu1 %vm354_vm0, %v1038_v33  ;;  %984 = vmatmul.mubr.msk.bf16.vlgmr.msra.gmra.mxu0 %vm354_vm0, %v1039_v34 }
  0x99   : > { %975 = vmatprep.mubr.msk.bf16.mxu1 %vm354_vm0, %v1040_v35  ;;  %987 = vmatprep.mubr.msk.bf16.mxu0 %vm354_vm0, %v1041_v36 }
  0x9b   : > { %v684_v43 = vpop.permute.xlu1 %683  ;;  %v679_v46 = vpop.permute.xlu0 %678 }
  0x9f   : > { %v689_v51 = vpop.permute.xlu1 %688  ;;  %v694_v55 = vpop.permute.xlu0 %693 }
  0xa0   : > { %976 = vmatmul.mubr.msk.bf16.gmra.mxu1 %vm354_vm0, %v1042_v37  ;;  %988 = vmatmul.mubr.msk.bf16.gmra.mxu0 %vm354_vm0, %v1043_v38 }
  0xa3   : > { %v699_v4 = vpop.permute.xlu1 %698  ;;  %v704_v11 = vpop.permute.xlu0 %703 }
  0xa7   : > { %v709_v26 = vpop.permute.xlu1 %708  ;;  %v714_v35 = vpop.permute.xlu0 %713 }
 0x150   : > { %v961_v39 = vpop.f32.mrf.mxu0  ;;  %v965_v40 = vpop.f32.mrf.mxu1 }
 0x152   : > { %v401_v41 = vpop.f32.mrf.mxu0  ;;  %v417_v42 = vpop.f32.mrf.mxu1 }
 0x154   : > { %v962_v44 = vpop.f32.mrf.mxu0  ;;  %v966_v45 = vpop.f32.mrf.mxu1 }
 0x156   : > { %v404_v47 = vpop.f32.mrf.mxu0  ;;  %v420_v48 = vpop.f32.mrf.mxu1 }
 0x158   : > { %v973_v49 = vpop.f32.mrf.mxu1  ;;  %v985_v50 = vpop.f32.mrf.mxu0 }
 0x159   : > { %v519_v52 = vadd.f32 %v973_v49, %v961_v39 }
 0x15a   : > { %v510_v53 = vpop.f32.mrf.mxu1  ;;  %v629_v54 = vpop.f32.mrf.mxu0 }
 0x15b   : > { %v662_v56 = vadd.f32 %v985_v50, %v519_v52  ;;  %v511_v57 = vadd.f32 %v510_v53, %v401_v41 }
 0x15c   : > { %v974_v58 = vpop.f32.mrf.mxu1  ;;  %v986_v59 = vpop.f32.mrf.mxu0 }
 0x15d   : > { %v718_v60 = vadd.f32 %v689_v51, %v662_v56  ;;  %v660_v61 = vadd.f32 %v629_v54, %v511_v57  ;;  %v522_v62 = vadd.f32 %v974_v58, %v962_v44 }
 0x15e   : > { %v513_v0 = vpop.f32.mrf.mxu1  ;;  %v632_v1 = vpop.f32.mrf.mxu0 }
 0x15f   : > { %v726_v2 = vmax.f32 %v718_v60, 0.0  ;;  %v716_v3 = vadd.f32 %v679_v46, %v660_v61  ;;  %v663_v5 = vadd.f32 %v986_v59, %v522_v62  ;;  %v514_v6 = vadd.f32 %v513_v0, %v404_v47 }
 0x160   : > { %v977_v7 = vpop.f32.mrf.mxu1  ;;  %v989_v8 = vpop.f32.mrf.mxu0 }
 0x161   : > { %v741_v9 = vmul.f32 %v932_v63, %v726_v2  ;;  %v724_v10 = vmax.f32 %v716_v3, 0.0  ;;  %v719_v12 = vadd.f32 %v694_v55, %v663_v5  ;;  %v661_v13 = vadd.f32 %v632_v1, %v514_v6 }
 0x162   : > { %v535_v14 = vadd.f32 %v977_v7, %v965_v40  ;;  %v526_v15 = vpop.f32.mrf.mxu1  ;;  %v645_v16 = vpop.f32.mrf.mxu0 }
 0x163   : > { %749 = vst [vmem:[%s1210_s28 + $0x10] sm:$0xff] %v741_v9  ;;  %v739_v17 = vmul.f32 %v932_v63, %v724_v10  ;;  %v727_v18 = vmax.f32 %v719_v12, 0.0  ;;  %v717_v19 = vadd.f32 %v684_v43, %v661_v13  ;;  %v527_v20 = vadd.f32 %v526_v15, %v417_v42 }
 0x164   : > { %v666_v21 = vadd.f32 %v989_v8, %v535_v14  ;;  %v978_v22 = vpop.f32.mrf.mxu1  ;;  %v990_v23 = vpop.f32.mrf.mxu0 }
 0x165   : > { %747 = vst [vmem:[%s1210_s28] sm:$0xff] %v739_v17  ;;  %v742_v24 = vmul.f32 %v932_v63, %v727_v18  ;;  %v725_v25 = vmax.f32 %v717_v19, 0.0  ;;  %v664_v27 = vadd.f32 %v645_v16, %v527_v20  ;;  %v538_v28 = vadd.f32 %v978_v22, %v966_v45 }
 0x166   : > { %v722_v29 = vadd.f32 %v709_v26, %v666_v21  ;;  %v529_v30 = vpop.f32.mrf.mxu1  ;;  %v648_v37 = vpop.f32.mrf.mxu0 }
 0x167   : > { %750 = vst [vmem:[%s1210_s28 + $0x18] sm:$0xff] %v742_v24  ;;  %v740_v31 = vmul.f32 %v932_v63, %v725_v25  ;;  %v720_v32 = vadd.f32 %v699_v4, %v664_v27  ;;  %v667_v33 = vadd.f32 %v990_v23, %v538_v28  ;;  %v530_v34 = vadd.f32 %v529_v30, %v420_v48 }
 0x168   : > { %v730_v36 = vmax.f32 %v722_v29, 0.0 }
 0x169   : > { %748 = vst [vmem:[%s1210_s28 + $0x8] sm:$0xff] %v740_v31  ;;  %v728_v38 = vmax.f32 %v720_v32, 0.0  ;;  %v723_v39 = vadd.f32 %v714_v35, %v667_v33  ;;  %v665_v40 = vadd.f32 %v648_v37, %v530_v34 }
 0x16a   : > { %v745_v41 = vmul.f32 %v932_v63, %v730_v36 }
 0x16b   : > { %v743_v42 = vmul.f32 %v932_v63, %v728_v38  ;;  %v731_v43 = vmax.f32 %v723_v39, 0.0  ;;  %v721_v44 = vadd.f32 %v704_v11, %v665_v40 }
 0x16c   : > { %753 = vst [vmem:[%s1210_s28 + $0x30] sm:$0xff] %v745_v41 }
 0x16d   : > { %751 = vst [vmem:[%s1210_s28 + $0x20] sm:$0xff] %v743_v42  ;;  %v746_v45 = vmul.f32 %v932_v63, %v731_v43  ;;  %v729_v46 = vmax.f32 %v721_v44, 0.0 }
 0x16f   : > { %754 = vst [vmem:[%s1210_s28 + $0x38] sm:$0xff] %v746_v45  ;;  %v744_v47 = vmul.f32 %v932_v63, %v729_v46 }
 0x171   : > { %752 = vst [vmem:[%s1210_s28 + $0x28] sm:$0xff] %v744_v47 }
 0x172 PF: > { %s14_s17 = sadd.s32 1, %s1066_s17   ;;  %s1234_s15 = smov %s1062_s16 }
 0x173   : > { %p11_p5 = scmp.ge.s32.totalorder %s14_s17, 4   ;;  %s1235_s16 = smov %s1237_s18 }
 0x175   :  { %13 = sbr.rel (!%p11_p5) target bundleno = 2 (0x2), region = 77 }

</bundles_post_ra>
